<compile_context>
chip_gen: v7x
topology: tpu7x:2x2x1
jax: 0.10.0
libtpu: 0.0.40
codegen_flags: <defaults>
</compile_context>

<pallas_src>
import functools
import math

import jax
import jax.numpy as jnp
import numpy as np
from jax.experimental import pallas as pl
from jax.experimental.pallas import tpu as pltpu


# ---------------------------------------------------------------------------
# in-kernel math helpers
# ---------------------------------------------------------------------------

def _layer_norm(x, w, b, eps=1e-5):
    # x: (T, D) f32, w/b: (1, D) f32 — F.layer_norm over the last dim.
    mu = jnp.mean(x, axis=-1, keepdims=True)
    var = jnp.mean((x - mu) ** 2, axis=-1, keepdims=True)
    return (x - mu) * jax.lax.rsqrt(var + eps) * w + b


def _gelu_tanh(x):
    # TODO(synk): nn.GELU() default is exact erf; the tanh form differs by
    # <~3e-3 absolute (inside the bf16-matmul noise floor) and keeps the
    # transcendental on the EUP instead of a long VPU polynomial.
    c = math.sqrt(2.0 / math.pi)
    return 0.5 * x * (1.0 + jnp.tanh(c * (x + 0.044715 * x * x * x)))


# ---------------------------------------------------------------------------
# kernel 1: LN1 + fused dense QKV projection + head split
# ---------------------------------------------------------------------------

def _qkv_kernel(x_ref, ln1_ref, wqkv_ref, bqkv_ref, q_ref, k_ref, v_ref,
                *, n_head, head_dim):
    f32, bf16 = jnp.float32, jnp.bfloat16
    H, hd = n_head, head_dim
    D = H * hd

    x = x_ref[0].astype(f32)                                    # (TS, D)
    lnv = ln1_ref[...]
    y = _layer_norm(x, lnv[0:1], lnv[1:2])

    # One dense (TS, D) @ (D, 3D) matmul — K=D, N=3D fill the MXU (review #1).
    # 1/sqrt(head_dim) is already folded into the Q third of weight + bias.
    qkv = jnp.dot(y.astype(bf16), wqkv_ref[...],
                  preferred_element_type=f32) + bqkv_ref[...]   # (TS, 3D) f32
    qkv = qkv.astype(q_ref.dtype)

    # Head split via static lane slices; (B, H, S, hd) layout feeds the
    # flash-attention kernel without any per-step relayout.
    for h in range(H):
        q_ref[0, h] = qkv[:, h * hd:(h + 1) * hd]
        k_ref[0, h] = qkv[:, D + h * hd:D + (h + 1) * hd]
        v_ref[0, h] = qkv[:, 2 * D + h * hd:2 * D + (h + 1) * hd]


# ---------------------------------------------------------------------------
# kernel 2: flash attention (online softmax) + out-projection + residual
# ---------------------------------------------------------------------------

def _attn_kernel(x_ref, q_ref, k_ref, v_ref, wo_ref, bout_ref, o_ref,
                 m_sc, l_sc, acc_sc, *, n_head):
    f32, bf16 = jnp.float32, jnp.bfloat16
    ki = pl.program_id(2)

    @pl.when(ki == 0)
    def _():
        m_sc[...] = jnp.full_like(m_sc, -jnp.inf)
        l_sc[...] = jnp.zeros_like(l_sc)
        acc_sc[...] = jnp.zeros_like(acc_sc)

    q = q_ref[0]                       # (H, TQ, hd) bf16, scale pre-folded
    k = k_ref[0]                       # (H, TK, hd) bf16
    v = v_ref[0]                       # (H, TK, hd) bf16

    # Scores for this kv tile only — the full (H, S, S) tensor never exists.
    s = jnp.einsum('hqe,hke->hqk', q, k, preferred_element_type=f32)
    m_prev = m_sc[...]
    m_new = jnp.maximum(m_prev, jnp.max(s, axis=-1, keepdims=True))
    alpha = jnp.exp(m_prev - m_new)
    # Single f32 exp pass (v5e-safe) + single bf16 cast feeding the MXU; the
    # 1/l scaling is deferred out of the S^2 loop to the epilogue.
    p = jnp.exp(s - m_new)
    l_sc[...] = alpha * l_sc[...] + jnp.sum(p, axis=-1, keepdims=True)
    acc_sc[...] = alpha * acc_sc[...] + jnp.einsum(
        'hqk,hke->hqe', p.astype(bf16), v, preferred_element_type=f32)
    m_sc[...] = m_new

    @pl.when(ki == pl.num_programs(2) - 1)
    def _():
        o = acc_sc[...] * pl.reciprocal(l_sc[...], approx=True)   # (H,TQ,hd)
        # Fuse head-concat + out-projection into one dense (TQ,D)@(D,D)
        # matmul — the MXU accumulates over heads (review #2); no (H,S,D)
        # f32 intermediate and no per-head VPU adds.
        o2 = jnp.concatenate([o[h] for h in range(n_head)],
                             axis=-1).astype(bf16)                # (TQ, D)
        attn = jnp.dot(o2, wo_ref[...], preferred_element_type=f32)
        o_ref[0] = (x_ref[0].astype(f32) + attn + bout_ref[...]
                    ).astype(o_ref.dtype)


# ---------------------------------------------------------------------------
# kernel 3: LN2 + MLP + residual
# ---------------------------------------------------------------------------

def _mlp_kernel(x_ref, ln2_ref, wfc_ref, bfc_ref, wproj_ref, bproj_ref, o_ref):
    f32, bf16 = jnp.float32, jnp.bfloat16
    x = x_ref[0].astype(f32)                                     # (TS, D)
    lnv = ln2_ref[...]
    y = _layer_norm(x, lnv[0:1], lnv[1:2])
    h1 = jnp.dot(y.astype(bf16), wfc_ref[...],
                 preferred_element_type=f32) + bfc_ref[...]      # (TS, 4D)
    h1 = _gelu_tanh(h1)
    m = jnp.dot(h1.astype(bf16), wproj_ref[...],
                preferred_element_type=f32) + bproj_ref[...]     # (TS, D)
    o_ref[0] = (x + m).astype(o_ref.dtype)


# ---------------------------------------------------------------------------
# wrappers
# ---------------------------------------------------------------------------

_ROW_TILE_TARGET = 256     # row tile for the projection / MLP calls
_KV_TILE_TARGET = 256      # kv tile for the flash-attention loop


def _pick_tile(n, target):
    """Largest multiple-of-8 divisor of n that is <= target (falls back to n)."""
    if n <= target:
        return n
    for t in range(target, 7, -1):
        if t % 8 == 0 and n % t == 0:
            return t
    return n


def _vmem_limit_bytes():
    # Review item 6: size the scoped VMEM limit per generation (~102 MiB on
    # v5e/v6e, ~51 MiB on v7x) instead of a hard-coded 48 MiB.
    try:
        cap = int(pltpu.get_tpu_info().vmem_capacity_bytes)
    except Exception:
        cap = 128 * 1024 * 1024
    return max(32 * 1024 * 1024, int(cap * 0.8))


def _const_spec(arr):
    zeros = (0,) * arr.ndim
    return pl.BlockSpec(arr.shape, lambda *_: zeros)


def residual_attention_block_bsd(x_bsd, prepared, n_head):
    """Batch-major entry point: (B, S, D) -> (B, S, D)."""
    B, S, D = x_bsd.shape
    H = n_head
    hd = D // H
    f32, bf16 = jnp.float32, jnp.bfloat16

    TS = _pick_tile(S, _ROW_TILE_TARGET)
    TQ = _pick_tile(S, _ROW_TILE_TARGET)
    TK = _pick_tile(S, _KV_TILE_TARGET)
    vmem_limit = _vmem_limit_bytes()

    params2 = pltpu.CompilerParams(
        dimension_semantics=("parallel", "parallel"),
        vmem_limit_bytes=vmem_limit)
    params3 = pltpu.CompilerParams(
        dimension_semantics=("parallel", "parallel", "arbitrary"),
        vmem_limit_bytes=vmem_limit)

    # ---- call 1: LN1 + dense QKV projection, head-split (B,H,S,hd) outputs.
    head_spec = pl.BlockSpec((1, H, TS, hd), lambda b, si: (b, 0, si, 0))
    q, k, v = pl.pallas_call(
        functools.partial(_qkv_kernel, n_head=H, head_dim=hd),
        out_shape=[jax.ShapeDtypeStruct((B, H, S, hd), bf16)] * 3,
        grid=(B, S // TS),
        in_specs=[pl.BlockSpec((1, TS, D), lambda b, si: (b, si, 0)),
                  _const_spec(prepared["ln1"]),
                  _const_spec(prepared["w_qkv_t"]),
                  _const_spec(prepared["b_qkv"])],
        out_specs=[head_spec, head_spec, head_spec],
        compiler_params=params2,
    )(x_bsd, prepared["ln1"], prepared["w_qkv_t"], prepared["b_qkv"])

    # ---- call 2: flash attention over kv tiles + out-projection + residual.
    x2 = pl.pallas_call(
        functools.partial(_attn_kernel, n_head=H),
        out_shape=jax.ShapeDtypeStruct((B, S, D), f32),
        grid=(B, S // TQ, S // TK),
        in_specs=[pl.BlockSpec((1, TQ, D), lambda b, qi, ki: (b, qi, 0)),
                  pl.BlockSpec((1, H, TQ, hd), lambda b, qi, ki: (b, 0, qi, 0)),
                  pl.BlockSpec((1, H, TK, hd), lambda b, qi, ki: (b, 0, ki, 0)),
                  pl.BlockSpec((1, H, TK, hd), lambda b, qi, ki: (b, 0, ki, 0)),
                  _const_spec(prepared["wo_t"]),
                  _const_spec(prepared["b_out"])],
        out_specs=pl.BlockSpec((1, TQ, D), lambda b, qi, ki: (b, qi, 0)),
        scratch_shapes=[pltpu.VMEM((H, TQ, 1), f32),     # running max m
                        pltpu.VMEM((H, TQ, 1), f32),     # running denom l
                        pltpu.VMEM((H, TQ, hd), f32)],   # running acc
        compiler_params=params3,
    )(x_bsd, q, k, v, prepared["wo_t"], prepared["b_out"])

    # ---- call 3: LN2 + MLP + residual.
    out = pl.pallas_call(
        _mlp_kernel,
        out_shape=jax.ShapeDtypeStruct((B, S, D), x_bsd.dtype),
        grid=(B, S // TS),
        in_specs=[pl.BlockSpec((1, TS, D), lambda b, si: (b, si, 0)),
                  _const_spec(prepared["ln2"]),
                  _const_spec(prepared["w_fc_t"]),
                  _const_spec(prepared["b_fc"]),
                  _const_spec(prepared["w_proj_t"]),
                  _const_spec(prepared["b_proj"])],
        out_specs=pl.BlockSpec((1, TS, D), lambda b, si: (b, si, 0)),
        compiler_params=params2,
    )(x2, prepared["ln2"], prepared["w_fc_t"], prepared["b_fc"],
      prepared["w_proj_t"], prepared["b_proj"])

    return out


def residual_attention_block(x_sbd, prepared, n_head):
    """Seq-first (S, B, D) wrapper matching torch.nn.MultiheadAttention."""
    out = residual_attention_block_bsd(jnp.transpose(x_sbd, (1, 0, 2)),
                                       prepared, n_head)
    return jnp.transpose(out, (1, 0, 2))


# ---------------------------------------------------------------------------
# host-side parameter preparation (free one-time rewrites of PyTorch params)
# ---------------------------------------------------------------------------

def prepare_params(raw, n_head):
    D = raw["ln1_w"].shape[0]
    hd = D // n_head
    scale = 1.0 / math.sqrt(hd)
    f32, bf16 = jnp.float32, jnp.bfloat16

    # Fold 1/sqrt(head_dim) into the Q third of the packed in-projection.
    scale_vec = jnp.concatenate([jnp.full((D,), scale, f32),
                                 jnp.ones((2 * D,), f32)])
    w_qkv_t = raw["in_proj_w"].T * scale_vec[None, :]            # (D, 3D)
    b_qkv = (raw["in_proj_b"] * scale_vec).reshape(1, 3 * D)

    return {
        "ln1": jnp.stack([raw["ln1_w"], raw["ln1_b"]]).astype(f32),     # (2,D)
        "w_qkv_t": w_qkv_t.astype(bf16),                                # (D,3D)
        "b_qkv": b_qkv.astype(f32),                                     # (1,3D)
        "wo_t": raw["out_proj_w"].T.astype(bf16),                       # (D,D)
        "b_out": raw["out_proj_b"].reshape(1, D).astype(f32),           # (1,D)
        "ln2": jnp.stack([raw["ln2_w"], raw["ln2_b"]]).astype(f32),     # (2,D)
        "w_fc_t": raw["fc_w"].T.astype(bf16),                           # (D,4D)
        "b_fc": raw["fc_b"].reshape(1, -1).astype(f32),                 # (1,4D)
        "w_proj_t": raw["proj_w"].T.astype(bf16),                       # (4D,D)
        "b_proj": raw["proj_b"].reshape(1, D).astype(f32),              # (1,D)
    }


def init_raw_params(key, d_model, n_head, mlp_ratio=4.0):
    mlp_width = int(d_model * mlp_ratio)
    ks = jax.random.split(key, 12)

    def w(k, shape, scale=0.05):
        return (scale * jax.random.normal(k, shape)).astype(jnp.float32)

    return {
        "ln1_w": 1.0 + w(ks[0], (d_model,), 0.02),
        "ln1_b": w(ks[1], (d_model,), 0.02),
        "in_proj_w": w(ks[2], (3 * d_model, d_model)),
        "in_proj_b": w(ks[3], (3 * d_model,), 0.02),
        "out_proj_w": w(ks[4], (d_model, d_model)),
        "out_proj_b": w(ks[5], (d_model,), 0.02),
        "ln2_w": 1.0 + w(ks[6], (d_model,), 0.02),
        "ln2_b": w(ks[7], (d_model,), 0.02),
        "fc_w": w(ks[8], (mlp_width, d_model)),
        "fc_b": w(ks[9], (mlp_width,), 0.02),
        "proj_w": w(ks[10], (d_model, mlp_width)),
        "proj_b": w(ks[11], (d_model,), 0.02),
    }


# ---------------------------------------------------------------------------
# independent pure-JAX f32 reference (mirrors the PyTorch module directly)
# ---------------------------------------------------------------------------

def reference_forward(x_sbd, raw, n_head):
    S, B, D = x_sbd.shape
    hd = D // n_head
    scale = 1.0 / math.sqrt(hd)

    def ln(x, w, b, eps=1e-5):
        mu = x.mean(-1, keepdims=True)
        var = ((x - mu) ** 2).mean(-1, keepdims=True)
        return (x - mu) * jax.lax.rsqrt(var + eps) * w + b

    def one(x):                                               # x: (S, D)
        y = ln(x, raw["ln1_w"], raw["ln1_b"])
        qkv = y @ raw["in_proj_w"].T + raw["in_proj_b"]
        q, k, v = jnp.split(qkv, 3, axis=-1)
        heads = []
        for h in range(n_head):
            sl = slice(h * hd, (h + 1) * hd)
            s = (q[:, sl] * scale) @ k[:, sl].T
            p = jax.nn.softmax(s, axis=-1)
            heads.append(p @ v[:, sl])
        o = jnp.concatenate(heads, axis=-1)
        x = x + o @ raw["out_proj_w"].T + raw["out_proj_b"]
        y2 = ln(x, raw["ln2_w"], raw["ln2_b"])
        h1 = jax.nn.gelu(y2 @ raw["fc_w"].T + raw["fc_b"], approximate=False)
        return x + h1 @ raw["proj_w"].T + raw["proj_b"]

    x_bsd = jnp.transpose(x_sbd, (1, 0, 2))
    return jnp.transpose(jax.vmap(one)(x_bsd), (1, 0, 2))


if __name__ == "__main__":
    S, B, D, H = 8, 2, 32, 4            # seq, batch, d_model, n_head
    key = jax.random.PRNGKey(0)
    k_x, k_p = jax.random.split(key)
    x = jax.random.normal(k_x, (S, B, D), dtype=jnp.float32)

    raw = init_raw_params(k_p, D, H, mlp_ratio=4.0)
    prepared = prepare_params(raw, H)

    out = residual_attention_block(x, prepared, H)
    out = jax.block_until_ready(out)

    ref = reference_forward(x, raw, H)
    assert out.shape == (S, B, D) and out.dtype == jnp.float32
    # bf16 matmuls (f32 accumulate) + approx reciprocal + tanh-GELU vs an
    # exact-f32 reference: differences stay well below 1e-2 at these scales.
    np.testing.assert_allclose(np.asarray(out), np.asarray(ref),
                               atol=1e-2, rtol=1e-2)
    print("KERNEL_OK")
</pallas_src>

<mosaic_0001>
module attributes {stable_mosaic.version = 11 : i64} {
  func.func @_qkv_kernel(%arg0: i32, %arg1: i32, %arg2: memref<1x8x32xf32, #tpu.memory_space<vmem>>, %arg3: memref<2x32xf32, #tpu.memory_space<vmem>>, %arg4: memref<32x96xbf16, #tpu.memory_space<vmem>>, %arg5: memref<1x96xf32, #tpu.memory_space<vmem>>, %arg6: memref<1x4x8x8xbf16, #tpu.memory_space<vmem>>, %arg7: memref<1x4x8x8xbf16, #tpu.memory_space<vmem>>, %arg8: memref<1x4x8x8xbf16, #tpu.memory_space<vmem>>) attributes {dimension_semantics = [#tpu.dimension_semantics<parallel>, #tpu.dimension_semantics<parallel>], iteration_bounds = array<i64: 2, 1>, scalar_prefetch = 0 : i64, scratch_operands = 0 : i64, tpu.core_type = #tpu.core_type<tc>, window_params = [{transform_indices = @transform_0, window_bounds = array<i64: 1, 8, 32>}, {pipeline_mode = #tpu.pipeline_mode<synchronous>, transform_indices = @transform_1, window_bounds = array<i64: 2, 32>}, {pipeline_mode = #tpu.pipeline_mode<synchronous>, transform_indices = @transform_2, window_bounds = array<i64: 32, 96>}, {pipeline_mode = #tpu.pipeline_mode<synchronous>, transform_indices = @transform_3, window_bounds = array<i64: 1, 96>}, {transform_indices = @transform_4, window_bounds = array<i64: 1, 4, 8, 8>}, {transform_indices = @transform_5, window_bounds = array<i64: 1, 4, 8, 8>}, {transform_indices = @transform_6, window_bounds = array<i64: 1, 4, 8, 8>}]} {
    %c0 = arith.constant 0 : index
    %c0_0 = arith.constant 0 : index
    %c0_1 = arith.constant 0 : index
    %0 = vector.load %arg2[%c0, %c0_0, %c0_1] : memref<1x8x32xf32, #tpu.memory_space<vmem>>, vector<1x8x32xf32>
    %1 = vector.shape_cast %0 : vector<1x8x32xf32> to vector<8x32xf32>
    %c0_2 = arith.constant 0 : index
    %c0_3 = arith.constant 0 : index
    %2 = vector.load %arg3[%c0_2, %c0_3] : memref<2x32xf32, #tpu.memory_space<vmem>>, vector<2x32xf32>
    %3 = vector.extract_strided_slice %2 {offsets = [0, 0], sizes = [1, 32], strides = [1, 1]} : vector<2x32xf32> to vector<1x32xf32>
    %4 = vector.extract_strided_slice %2 {offsets = [1, 0], sizes = [1, 32], strides = [1, 1]} : vector<2x32xf32> to vector<1x32xf32>
    %cst = arith.constant dense<0.000000e+00> : vector<8xf32>
    %5 = vector.multi_reduction <add>, %1, %cst [1] : vector<8x32xf32> to vector<8xf32>
    %6 = vector.shape_cast %5 : vector<8xf32> to vector<8x1xf32>
    %cst_4 = arith.constant 3.200000e+01 : f32
    %7 = vector.broadcast %cst_4 : f32 to vector<8x1xf32>
    %8 = arith.divf %6, %7 : vector<8x1xf32>
    %9 = vector.broadcast %8 : vector<8x1xf32> to vector<8x32xf32>
    %10 = arith.subf %1, %9 : vector<8x32xf32>
    %11 = arith.mulf %10, %10 : vector<8x32xf32>
    %cst_5 = arith.constant dense<0.000000e+00> : vector<8xf32>
    %12 = vector.multi_reduction <add>, %11, %cst_5 [1] : vector<8x32xf32> to vector<8xf32>
    %13 = vector.shape_cast %12 : vector<8xf32> to vector<8x1xf32>
    %cst_6 = arith.constant 3.200000e+01 : f32
    %14 = vector.broadcast %cst_6 : f32 to vector<8x1xf32>
    %15 = arith.divf %13, %14 : vector<8x1xf32>
    %16 = vector.broadcast %8 : vector<8x1xf32> to vector<8x32xf32>
    %17 = arith.subf %1, %16 : vector<8x32xf32>
    %cst_7 = arith.constant 9.99999974E-6 : f32
    %18 = vector.broadcast %cst_7 : f32 to vector<8x1xf32>
    %19 = arith.addf %15, %18 : vector<8x1xf32>
    %20 = math.rsqrt %19 : vector<8x1xf32>
    %21 = vector.broadcast %20 : vector<8x1xf32> to vector<8x32xf32>
    %22 = arith.mulf %17, %21 : vector<8x32xf32>
    %23 = vector.broadcast %3 : vector<1x32xf32> to vector<8x32xf32>
    %24 = arith.mulf %22, %23 : vector<8x32xf32>
    %25 = vector.broadcast %4 : vector<1x32xf32> to vector<8x32xf32>
    %26 = arith.addf %24, %25 : vector<8x32xf32>
    %27 = arith.truncf %26 : vector<8x32xf32> to vector<8x32xbf16>
    %c0_8 = arith.constant 0 : index
    %c0_9 = arith.constant 0 : index
    %28 = vector.load %arg4[%c0_8, %c0_9] : memref<32x96xbf16, #tpu.memory_space<vmem>>, vector<32x96xbf16>
    %cst_10 = arith.constant dense<0.000000e+00> : vector<8x96xf32>
    %29 = tpu.matmul %27, %28, %cst_10 {dimension_numbers = #tpu.dot_dimension_numbers<[1], [0], [0], [1], [0, 0, 1, 1], [], []>} : vector<8x32xbf16>, vector<32x96xbf16>, vector<8x96xf32> -> vector<8x96xf32>
    %c0_11 = arith.constant 0 : index
    %c0_12 = arith.constant 0 : index
    %30 = vector.load %arg5[%c0_11, %c0_12] : memref<1x96xf32, #tpu.memory_space<vmem>>, vector<1x96xf32>
    %31 = vector.broadcast %30 : vector<1x96xf32> to vector<8x96xf32>
    %32 = arith.addf %29, %31 : vector<8x96xf32>
    %33 = arith.truncf %32 : vector<8x96xf32> to vector<8x96xbf16>
    %34 = vector.extract_strided_slice %33 {offsets = [0, 0], sizes = [8, 8], strides = [1, 1]} : vector<8x96xbf16> to vector<8x8xbf16>
    %c0_13 = arith.constant 0 : index
    %c0_14 = arith.constant 0 : index
    %c0_15 = arith.constant 0 : index
    %c0_16 = arith.constant 0 : index
    %35 = vector.load %arg6[%c0_13, %c0_14, %c0_15, %c0_16] : memref<1x4x8x8xbf16, #tpu.memory_space<vmem>>, vector<1x1x8x8xbf16>
    %36 = vector.shape_cast %35 : vector<1x1x8x8xbf16> to vector<8x8xbf16>
    %37 = vector.shape_cast %34 : vector<8x8xbf16> to vector<1x1x8x8xbf16>
    tpu.vector_store %arg6[%c0_13, %c0_14, %c0_15, %c0_16], %37 {strides = array<i32>} : memref<1x4x8x8xbf16, #tpu.memory_space<vmem>>, vector<1x1x8x8xbf16>,
    %38 = vector.extract_strided_slice %33 {offsets = [0, 32], sizes = [8, 8], strides = [1, 1]} : vector<8x96xbf16> to vector<8x8xbf16>
    %c0_17 = arith.constant 0 : index
    %c0_18 = arith.constant 0 : index
    %c0_19 = arith.constant 0 : index
    %c0_20 = arith.constant 0 : index
    %39 = vector.load %arg7[%c0_17, %c0_18, %c0_19, %c0_20] : memref<1x4x8x8xbf16, #tpu.memory_space<vmem>>, vector<1x1x8x8xbf16>
    %40 = vector.shape_cast %39 : vector<1x1x8x8xbf16> to vector<8x8xbf16>
    %41 = vector.shape_cast %38 : vector<8x8xbf16> to vector<1x1x8x8xbf16>
    tpu.vector_store %arg7[%c0_17, %c0_18, %c0_19, %c0_20], %41 {strides = array<i32>} : memref<1x4x8x8xbf16, #tpu.memory_space<vmem>>, vector<1x1x8x8xbf16>,
    %42 = vector.extract_strided_slice %33 {offsets = [0, 64], sizes = [8, 8], strides = [1, 1]} : vector<8x96xbf16> to vector<8x8xbf16>
    %c0_21 = arith.constant 0 : index
    %c0_22 = arith.constant 0 : index
    %c0_23 = arith.constant 0 : index
    %c0_24 = arith.constant 0 : index
    %43 = vector.load %arg8[%c0_21, %c0_22, %c0_23, %c0_24] : memref<1x4x8x8xbf16, #tpu.memory_space<vmem>>, vector<1x1x8x8xbf16>
    %44 = vector.shape_cast %43 : vector<1x1x8x8xbf16> to vector<8x8xbf16>
    %45 = vector.shape_cast %42 : vector<8x8xbf16> to vector<1x1x8x8xbf16>
    tpu.vector_store %arg8[%c0_21, %c0_22, %c0_23, %c0_24], %45 {strides = array<i32>} : memref<1x4x8x8xbf16, #tpu.memory_space<vmem>>, vector<1x1x8x8xbf16>,
    %46 = vector.extract_strided_slice %33 {offsets = [0, 8], sizes = [8, 8], strides = [1, 1]} : vector<8x96xbf16> to vector<8x8xbf16>
    %c0_25 = arith.constant 0 : index
    %c1 = arith.constant 1 : index
    %c0_26 = arith.constant 0 : index
    %c0_27 = arith.constant 0 : index
    %47 = vector.load %arg6[%c0_25, %c1, %c0_26, %c0_27] : memref<1x4x8x8xbf16, #tpu.memory_space<vmem>>, vector<1x1x8x8xbf16>
    %48 = vector.shape_cast %47 : vector<1x1x8x8xbf16> to vector<8x8xbf16>
    %49 = vector.shape_cast %46 : vector<8x8xbf16> to vector<1x1x8x8xbf16>
    tpu.vector_store %arg6[%c0_25, %c1, %c0_26, %c0_27], %49 {strides = array<i32>} : memref<1x4x8x8xbf16, #tpu.memory_space<vmem>>, vector<1x1x8x8xbf16>,
    %50 = vector.extract_strided_slice %33 {offsets = [0, 40], sizes = [8, 8], strides = [1, 1]} : vector<8x96xbf16> to vector<8x8xbf16>
    %c0_28 = arith.constant 0 : index
    %c1_29 = arith.constant 1 : index
    %c0_30 = arith.constant 0 : index
    %c0_31 = arith.constant 0 : index
    %51 = vector.load %arg7[%c0_28, %c1_29, %c0_30, %c0_31] : memref<1x4x8x8xbf16, #tpu.memory_space<vmem>>, vector<1x1x8x8xbf16>
    %52 = vector.shape_cast %51 : vector<1x1x8x8xbf16> to vector<8x8xbf16>
    %53 = vector.shape_cast %50 : vector<8x8xbf16> to vector<1x1x8x8xbf16>
    tpu.vector_store %arg7[%c0_28, %c1_29, %c0_30, %c0_31], %53 {strides = array<i32>} : memref<1x4x8x8xbf16, #tpu.memory_space<vmem>>, vector<1x1x8x8xbf16>,
    %54 = vector.extract_strided_slice %33 {offsets = [0, 72], sizes = [8, 8], strides = [1, 1]} : vector<8x96xbf16> to vector<8x8xbf16>
    %c0_32 = arith.constant 0 : index
    %c1_33 = arith.constant 1 : index
    %c0_34 = arith.constant 0 : index
    %c0_35 = arith.constant 0 : index
    %55 = vector.load %arg8[%c0_32, %c1_33, %c0_34, %c0_35] : memref<1x4x8x8xbf16, #tpu.memory_space<vmem>>, vector<1x1x8x8xbf16>
    %56 = vector.shape_cast %55 : vector<1x1x8x8xbf16> to vector<8x8xbf16>
    %57 = vector.shape_cast %54 : vector<8x8xbf16> to vector<1x1x8x8xbf16>
    tpu.vector_store %arg8[%c0_32, %c1_33, %c0_34, %c0_35], %57 {strides = array<i32>} : memref<1x4x8x8xbf16, #tpu.memory_space<vmem>>, vector<1x1x8x8xbf16>,
    %58 = vector.extract_strided_slice %33 {offsets = [0, 16], sizes = [8, 8], strides = [1, 1]} : vector<8x96xbf16> to vector<8x8xbf16>
    %c0_36 = arith.constant 0 : index
    %c2 = arith.constant 2 : index
    %c0_37 = arith.constant 0 : index
    %c0_38 = arith.constant 0 : index
    %59 = vector.load %arg6[%c0_36, %c2, %c0_37, %c0_38] : memref<1x4x8x8xbf16, #tpu.memory_space<vmem>>, vector<1x1x8x8xbf16>
    %60 = vector.shape_cast %59 : vector<1x1x8x8xbf16> to vector<8x8xbf16>
    %61 = vector.shape_cast %58 : vector<8x8xbf16> to vector<1x1x8x8xbf16>
    tpu.vector_store %arg6[%c0_36, %c2, %c0_37, %c0_38], %61 {strides = array<i32>} : memref<1x4x8x8xbf16, #tpu.memory_space<vmem>>, vector<1x1x8x8xbf16>,
    %62 = vector.extract_strided_slice %33 {offsets = [0, 48], sizes = [8, 8], strides = [1, 1]} : vector<8x96xbf16> to vector<8x8xbf16>
    %c0_39 = arith.constant 0 : index
    %c2_40 = arith.constant 2 : index
    %c0_41 = arith.constant 0 : index
    %c0_42 = arith.constant 0 : index
    %63 = vector.load %arg7[%c0_39, %c2_40, %c0_41, %c0_42] : memref<1x4x8x8xbf16, #tpu.memory_space<vmem>>, vector<1x1x8x8xbf16>
    %64 = vector.shape_cast %63 : vector<1x1x8x8xbf16> to vector<8x8xbf16>
    %65 = vector.shape_cast %62 : vector<8x8xbf16> to vector<1x1x8x8xbf16>
    tpu.vector_store %arg7[%c0_39, %c2_40, %c0_41, %c0_42], %65 {strides = array<i32>} : memref<1x4x8x8xbf16, #tpu.memory_space<vmem>>, vector<1x1x8x8xbf16>,
    %66 = vector.extract_strided_slice %33 {offsets = [0, 80], sizes = [8, 8], strides = [1, 1]} : vector<8x96xbf16> to vector<8x8xbf16>
    %c0_43 = arith.constant 0 : index
    %c2_44 = arith.constant 2 : index
    %c0_45 = arith.constant 0 : index
    %c0_46 = arith.constant 0 : index
    %67 = vector.load %arg8[%c0_43, %c2_44, %c0_45, %c0_46] : memref<1x4x8x8xbf16, #tpu.memory_space<vmem>>, vector<1x1x8x8xbf16>
    %68 = vector.shape_cast %67 : vector<1x1x8x8xbf16> to vector<8x8xbf16>
    %69 = vector.shape_cast %66 : vector<8x8xbf16> to vector<1x1x8x8xbf16>
    tpu.vector_store %arg8[%c0_43, %c2_44, %c0_45, %c0_46], %69 {strides = array<i32>} : memref<1x4x8x8xbf16, #tpu.memory_space<vmem>>, vector<1x1x8x8xbf16>,
    %70 = vector.extract_strided_slice %33 {offsets = [0, 24], sizes = [8, 8], strides = [1, 1]} : vector<8x96xbf16> to vector<8x8xbf16>
    %c0_47 = arith.constant 0 : index
    %c3 = arith.constant 3 : index
    %c0_48 = arith.constant 0 : index
    %c0_49 = arith.constant 0 : index
    %71 = vector.load %arg6[%c0_47, %c3, %c0_48, %c0_49] : memref<1x4x8x8xbf16, #tpu.memory_space<vmem>>, vector<1x1x8x8xbf16>
    %72 = vector.shape_cast %71 : vector<1x1x8x8xbf16> to vector<8x8xbf16>
    %73 = vector.shape_cast %70 : vector<8x8xbf16> to vector<1x1x8x8xbf16>
    tpu.vector_store %arg6[%c0_47, %c3, %c0_48, %c0_49], %73 {strides = array<i32>} : memref<1x4x8x8xbf16, #tpu.memory_space<vmem>>, vector<1x1x8x8xbf16>,
    %74 = vector.extract_strided_slice %33 {offsets = [0, 56], sizes = [8, 8], strides = [1, 1]} : vector<8x96xbf16> to vector<8x8xbf16>
    %c0_50 = arith.constant 0 : index
    %c3_51 = arith.constant 3 : index
    %c0_52 = arith.constant 0 : index
    %c0_53 = arith.constant 0 : index
    %75 = vector.load %arg7[%c0_50, %c3_51, %c0_52, %c0_53] : memref<1x4x8x8xbf16, #tpu.memory_space<vmem>>, vector<1x1x8x8xbf16>
    %76 = vector.shape_cast %75 : vector<1x1x8x8xbf16> to vector<8x8xbf16>
    %77 = vector.shape_cast %74 : vector<8x8xbf16> to vector<1x1x8x8xbf16>
    tpu.vector_store %arg7[%c0_50, %c3_51, %c0_52, %c0_53], %77 {strides = array<i32>} : memref<1x4x8x8xbf16, #tpu.memory_space<vmem>>, vector<1x1x8x8xbf16>,
    %78 = vector.extract_strided_slice %33 {offsets = [0, 88], sizes = [8, 8], strides = [1, 1]} : vector<8x96xbf16> to vector<8x8xbf16>
    %c0_54 = arith.constant 0 : index
    %c3_55 = arith.constant 3 : index
    %c0_56 = arith.constant 0 : index
    %c0_57 = arith.constant 0 : index
    %79 = vector.load %arg8[%c0_54, %c3_55, %c0_56, %c0_57] : memref<1x4x8x8xbf16, #tpu.memory_space<vmem>>, vector<1x1x8x8xbf16>
    %80 = vector.shape_cast %79 : vector<1x1x8x8xbf16> to vector<8x8xbf16>
    %81 = vector.shape_cast %78 : vector<8x8xbf16> to vector<1x1x8x8xbf16>
    tpu.vector_store %arg8[%c0_54, %c3_55, %c0_56, %c0_57], %81 {strides = array<i32>} : memref<1x4x8x8xbf16, #tpu.memory_space<vmem>>, vector<1x1x8x8xbf16>,
    return
  }
  func.func @transform_0(%arg0: i32, %arg1: i32) -> (i32, i32, i32) {
    %c0_i32 = arith.constant 0 : i32
    %c0_i32_0 = arith.constant 0 : i32
    return %arg0, %arg1, %c0_i32 : i32, i32, i32
  }
  func.func @transform_1(%arg0: i32, %arg1: i32) -> (i32, i32) {
    %c0_i32 = arith.constant 0 : i32
    %c0_i32_0 = arith.constant 0 : i32
    %c0_i32_1 = arith.constant 0 : i32
    return %c0_i32, %c0_i32_0 : i32, i32
  }
  func.func @transform_2(%arg0: i32, %arg1: i32) -> (i32, i32) {
    %c0_i32 = arith.constant 0 : i32
    %c0_i32_0 = arith.constant 0 : i32
    %c0_i32_1 = arith.constant 0 : i32
    return %c0_i32, %c0_i32_0 : i32, i32
  }
  func.func @transform_3(%arg0: i32, %arg1: i32) -> (i32, i32) {
    %c0_i32 = arith.constant 0 : i32
    %c0_i32_0 = arith.constant 0 : i32
    %c0_i32_1 = arith.constant 0 : i32
    return %c0_i32, %c0_i32_0 : i32, i32
  }
  func.func @transform_4(%arg0: i32, %arg1: i32) -> (i32, i32, i32, i32) {
    %c0_i32 = arith.constant 0 : i32
    %c0_i32_0 = arith.constant 0 : i32
    %c0_i32_1 = arith.constant 0 : i32
    return %arg0, %c0_i32, %arg1, %c0_i32_0 : i32, i32, i32, i32
  }
  func.func @transform_5(%arg0: i32, %arg1: i32) -> (i32, i32, i32, i32) {
    %c0_i32 = arith.constant 0 : i32
    %c0_i32_0 = arith.constant 0 : i32
    %c0_i32_1 = arith.constant 0 : i32
    return %arg0, %c0_i32, %arg1, %c0_i32_0 : i32, i32, i32, i32
  }
  func.func @transform_6(%arg0: i32, %arg1: i32) -> (i32, i32, i32, i32) {
    %c0_i32 = arith.constant 0 : i32
    %c0_i32_0 = arith.constant 0 : i32
    %c0_i32_1 = arith.constant 0 : i32
    return %arg0, %c0_i32, %arg1, %c0_i32_0 : i32, i32, i32, i32
  }
}

</mosaic_0001>

<bundles_post_ra>
// kernel: tpu_custom_call.1
= control target key start
LH: loop header
LB: loop body
LE: loop exit
PB: predicated region body
PF: predicated region fallthrough
CT: control target
= control target key end

     0   :  { %s1622_s0 = inlined_call_operand.hbm [shape: f32[2,8,32], index: 0, kind: input, shape index: {}]   ;;  %s1623_s1 = inlined_call_operand.hbm [shape: f32[2,32], index: 1, kind: input, shape index: {}]   ;;  %s1624_s2 = inlined_call_operand.hbm [shape: bf16[32,96], index: 2, kind: input, shape index: {}]   ;;  %s1625_s3 = inlined_call_operand.hbm [shape: f32[1,96], index: 3, kind: input, shape index: {}]   ;;  %s1626_s4 = inlined_call_operand.hbm [shape: bf16[2,4,8,8], index: 4, kind: output, shape index: {0}]   ;;  %s1627_s5 = inlined_call_operand.hbm [shape: bf16[2,4,8,8], index: 5, kind: output, shape index: {1}]   ;;  %s1628_s6 = inlined_call_operand.hbm [shape: bf16[2,4,8,8], index: 6, kind: output, shape index: {2}]  }
   0x1   :  { %1633 = sst [smem:[#allocation19_spill]] %s1623_s1 }
   0x2   :  { %12 = vsyncpa [#allocation3], 0 }
   0x3   :  { %14 = vsyncpa [#allocation3 + $0x1], 0 }
   0x4   :  { %15 = vsyncpa [#allocation6], 0 }
   0x5   :  { %16 = vsyncpa [#allocation9], 0 }
   0x6   :  { %17 = vsyncpa [#allocation4], 0 }
   0x7   :  { %19 = vsyncpa [#allocation4 + $0x1], 0 }
   0x8   :  { %20 = vsyncpa [#allocation12], 0 }
   0x9   :  { %22 = vsyncpa [#allocation12 + $0x1], 0  ;;  %s1241_s21 = smov 0   ;;  %s1243_s22 = smov 0  }
   0xa   :  { %s1245_s23 = smov 0   ;;  %s1247_s24 = smov 0  }
   0xb   :  { %s1249_s25 = smov 0   ;;  %s1251_s26 = smov 0  }
   0xc LB: > { %s1272_s27 = sadd.s32 4294967295, %s1181_s26   ;;  %s1632_s28 = sadd.s32 4294967294, %s1181_s26   ;;  %s1181_s26 = sphi %s1251_s26, %s28_s26   ;;  %s1177_s25 = sphi %s1249_s25, %s1657_s25   ;;  %s1173_s24 = sphi %s1247_s24, %s1656_s24   ;;  %s1169_s23 = sphi %s1245_s23, %s1655_s23   ;;  %s1165_s22 = sphi %s1243_s22, %s1654_s22   ;;  %s1161_s21 = sphi %s1241_s21, %s1653_s21  }
   0xd   : > { %p62_p0 = scmp.ne.s32.totalorder %s1165_s22, %s1161_s21  ;;  %p1629_p1 = scmp.eq.s32.totalorder %s1272_s27, 0 }
   0xe   : > { %p157_p3 = scmp.eq.s32.totalorder %s1632_s28, 1  ;;  %p739_p5 = scmp.ge.s32.totalorder %s1181_s26, 1 }
   0xf   : > { %p1283_p4 = por %p1629_p1, %p62_p0  ;;  %p220_p7 = scmp.lt.s32.totalorder %s1181_s26, 3 }
  0x10   : > { %p1288_p6 = por %p157_p3, %p62_p0  ;;  %s1183_s8 = smov [#allocation5]  }
  0x11   : > { %s1634_s29 = scalar_select %p1283_p4, 1, 0 }
  0x12   : > { %s1635_s30 = scalar_select %p1288_p6, 1, 0 }
  0x13   : > { %p1293_p8 = pnand %p739_p5, %p220_p7  ;;  %s233_s9 = sshll.u32 %s1183_s8, 4  ;;  %s234_s9 = int_to_ptr.vmem [resolvable:$true] %s233_s9 }
  0x14   : > { %s1184_s10 = smov [#allocation7]   ;;  %s1185_s13 = smov [#allocation8]  }
  0x15   : > { %s1636_s7 = scalar_select %p1293_p8, 1, 0 }
  0x16   : > { %p814_p10 = pneg %p1293_p8  ;;  %s243_s11 = sshll.u32 %s1184_s10, 4  ;;  %s1306_s11 = int_to_ptr.vmem [resolvable:$true] %s243_s11 }
  0x17   : > { %s1308_s14 = sshll.u32 %s1185_s13, 4  ;;  %s1638_s1 = sld [smem:[#allocation19_spill]]  ;;  %s258_s14 = int_to_ptr.vmem [resolvable:$true] %s1308_s14 }
  0x18   : > { %p1302_p11 = pnand %p814_p10, %p1629_p1 }
  0x1a   : > { %p1318_p13 = pneg %p1302_p11 }
  0x1d   : > { %s917_s17 = scalar_lea.hbm %s1638_s1, 32 }
  0x1e   : > { %p918_p12 = scmp.ne.s32.totalorder %s1638_s1, %s917_s17  ;;  %p924_p5 = scmp.lt.u32.totalorder %s917_s17, %s1638_s1 }
  0x20   : > { %p920_p0 = pnand %p1318_p13, %p918_p12 }
  0x22   : > { %p921_p3 = pneg %p920_p0 }
  0x24   : > { %p926_p7 = pnand %p924_p5, %p921_p3 }
  0x26   : > { %929 = shalt.err (!%p926_p7)
}
  0x27   : > { %s930_s13 = scalar_lea.vmem %s234_s9, 32  ;;  %p938_p2 = scmp.lt.s32.totalorder %s234_s9, %s234_s9 }
  0x28   : > { %p931_p10 = scmp.ne.s32.totalorder %s234_s9, %s930_s13  ;;  %p939_p6 = scmp.lt.s32.totalorder %s930_s13, %s930_s13 }
  0x2a   : > { %p933_p9 = pnand %p931_p10, %p1318_p13  ;;  %p940_p4 = por %p939_p6, %p938_p2 }
  0x2c   : > { %p934_p1 = pneg %p933_p9 }
  0x2e   : > { %p941_p8 = pnand %p940_p4, %p934_p1 }
  0x30   : > { %944 = shalt.err (!%p941_p8)
}
  0x31   : > { %817 = dma.hbm_to_vmem [thread:$0]  (!%p1302_p11), %s1638_s1, 32, %s234_s9, [#allocation6]  }
  0x32   : > { %s945_s19 = scalar_lea.hbm %s1624_s2, 256 }
  0x33   : > { %p946_p9 = scmp.ne.s32.totalorder %s1624_s2, %s945_s19  ;;  %p952_p1 = scmp.lt.u32.totalorder %s945_s19, %s1624_s2 }
  0x35   : > { %p948_p12 = pnand %p946_p9, %p1318_p13 }
  0x37   : > { %p949_p2 = pneg %p948_p12 }
  0x39   : > { %p954_p4 = pnand %p952_p1, %p949_p2 }
  0x3b   : > { %957 = shalt.err (!%p954_p4)
}
  0x3c   : > { %s958_s9 = scalar_lea.vmem %s1306_s11, 256  ;;  %p966_p3 = scmp.lt.s32.totalorder %s1306_s11, %s1306_s11 }
  0x3d   : > { %p959_p6 = scmp.ne.s32.totalorder %s1306_s11, %s958_s9  ;;  %p967_p5 = scmp.lt.s32.totalorder %s958_s9, %s958_s9 }
  0x3f   : > { %p961_p8 = pnand %p959_p6, %p1318_p13  ;;  %p968_p7 = por %p967_p5, %p966_p3 }
  0x41   : > { %p962_p0 = pneg %p961_p8 }
  0x43   : > { %p969_p10 = pnand %p968_p7, %p962_p0 }
  0x45   : > { %972 = shalt.err (!%p969_p10)
}
  0x46   : > { %s1186_s15 = smov 64   ;;  %s1187_s28 = smov 4  }
  0x47   : > { %820 = dma.hbm_to_vmem [thread:$0]  (!%p1302_p11), %s1624_s2, 256, %s1306_s11, [#allocation6], %s1186_s15, %s1186_s15, %s1187_s28  }
  0x48   : > { %s973_s8 = scalar_lea.hbm %s1625_s3, 16 }
  0x49   : > { %p974_p9 = scmp.ne.s32.totalorder %s1625_s3, %s973_s8  ;;  %p980_p1 = scmp.lt.u32.totalorder %s973_s8, %s1625_s3 }
  0x4b   : > { %p976_p12 = pnand %p974_p9, %p1318_p13 }
  0x4d   : > { %p977_p2 = pneg %p976_p12 }
  0x4f   : > { %p982_p4 = pnand %p980_p1, %p977_p2 }
  0x51   : > { %985 = shalt.err (!%p982_p4)
}
  0x52   : > { %s986_s16 = scalar_lea.vmem %s258_s14, 16  ;;  %s993_s11 = scalar_lea.vmem %s258_s14, 32 }
  0x53   : > { %p987_p6 = scmp.ne.s32.totalorder %s258_s14, %s986_s16  ;;  %p994_p3 = scmp.lt.s32.totalorder %s258_s14, %s258_s14 }
  0x54   : > { %p995_p5 = scmp.lt.s32.totalorder %s993_s11, %s986_s16 }
  0x55   : > { %p989_p8 = pnand %p987_p6, %p1318_p13 }
  0x56   : > { %p996_p7 = por %p995_p5, %p994_p3 }
  0x57   : > { %p990_p0 = pneg %p989_p8 }
  0x59   : > { %p997_p10 = pnand %p996_p7, %p990_p0 }
  0x5b   : > { %1000 = shalt.err (!%p997_p10)
}
  0x5c   : > { %823 = dma.hbm_to_vmem [thread:$0]  (!%p1302_p11), %s1625_s3, 16, %s258_s14, [#allocation9]  }
  0x5d   : > { %s49_s1 = sadd.s32 1, %s1169_s23  ;;  %s40_s20 = sadd.s32 1, %s1177_s25 }
  0x5e   : > { %p56_p13 = scmp.ne.s32.totalorder %s1169_s23, %s1165_s22  ;;  %p42_p9 = scmp.ge.s32.totalorder %s40_s20, 2 }
  0x5f   : > { %p57_p12 = scmp.eq.s32.totalorder %s1181_s26, 0  ;;  %p1640_p2 = scmp.eq.s32.totalorder %s1272_s27, 1 }
  0x60   : > { %p841_p4 = scmp.lt.s32.totalorder %s1181_s26, 2  ;;  %s1659_s20 = smov (%p42_p9, %s40_s20), 0 }
  0x61   : > { %p1383_p1 = por %p1640_p2, %p56_p13  ;;  %p58_p6 = por %p57_p12, %p56_p13 }
  0x62   : > { %s268_s17 = sand.u32 1, %s1169_s23   ;;  %s44_s18 = ssub.s32 %s1177_s25, %s1659_s20 }
  0x63   : > { %p47_p8 = scmp.eq.s32.totalorder %s44_s18, 0  ;;  %s744_s14 = sshll.u32 %s268_s17, 3 }
  0x64   : > { %s745_s19 = sshll.u32 %s1177_s25, 7  ;;  %s272_s16 = scalar_lea.vmem [#allocation2], %s744_s14 }
  0x65   : > { %s1395_s8 = scalar_select %p47_p8, %s1169_s23, %s49_s1  }
  0x66   : > { %s1400_s9 = scalar_lea.hbm %s1622_s0, %s745_s19  ;;  %s280_s11 = sshll.u32 %s272_s16, 4  ;;  %s1402_s11 = int_to_ptr.vmem [resolvable:$true] %s280_s11 }
  0x67   : > { %p1406_p11 = pnand %p841_p4, %p58_p6  ;;  %s269_s28 = scalar_lea.sflag [#allocation3], %s268_s17 }
  0x68   : > { %s1001_s1 = scalar_lea.hbm %s1400_s9, 128  ;;  %s1006_s19 = scalar_lea.hbm %s1622_s0, 256 }
  0x69   : > { %p1002_p0 = scmp.ne.s32.totalorder %s1400_s9, %s1001_s1  ;;  %p1003_p3 = pneg %p1406_p11 }
  0x6a   : > { %p1007_p10 = scmp.lt.u32.totalorder %s1400_s9, %s1622_s0  ;;  %p1008_p13 = scmp.lt.u32.totalorder %s1006_s19, %s1001_s1 }
  0x6b   : > { %p1004_p5 = pnand %p1003_p3, %p1002_p0  ;;  %p1010_p12 = scmp.lt.u32.totalorder %s1001_s1, %s1400_s9 }
  0x6c   : > { %p1009_p9 = por %p1008_p13, %p1007_p10 }
  0x6d   : > { %p1005_p7 = pneg %p1004_p5 }
  0x6e   : > { %p1011_p2 = por %p1010_p12, %p1009_p9 }
  0x70   : > { %p1012_p4 = pnand %p1011_p2, %p1005_p7 }
  0x72   : > { %1015 = shalt.err (!%p1012_p4)
}
  0x73   : > { %s1016_s17 = scalar_lea.vmem %s1402_s11, 128  ;;  %s1188_s16 = smov [#allocation2]  }
  0x74   : > { %p1017_p6 = scmp.ne.s32.totalorder %s1402_s11, %s1016_s17  ;;  %s1021_s18 = sshll.u32 %s1188_s16, 4  ;;  %s1022_s18 = int_to_ptr.vmem [resolvable:$false] %s1021_s18 }
  0x75   : > { %s1023_s14 = scalar_lea.vmem %s1022_s18, 256  ;;  %p1024_p5 = scmp.lt.s32.totalorder %s1402_s11, %s1022_s18 }
  0x76   : > { %p1019_p8 = pnand %p1017_p6, %p1003_p3  ;;  %p1025_p10 = scmp.lt.s32.totalorder %s1023_s14, %s1016_s17 }
  0x78   : > { %p1020_p0 = pneg %p1019_p8  ;;  %p1026_p13 = por %p1025_p10, %p1024_p5 }
  0x7a   : > { %p1027_p9 = pnand %p1026_p13, %p1020_p0 }
  0x7c   : > { %1030 = shalt.err (!%p1027_p9)
}
  0x7d   : > { %827 = dma.hbm_to_vmem [thread:$0]  (!%p1406_p11), %s1400_s9, 128, %s1402_s11, %s269_s28  }
  0x7e   : > { %p1643_p7 = scmp.ne.s32.totalorder %s1636_s7, 0 }
  0x7f   : > { %s1438_s1 = sand.u32 (!%p1643_p7), 1, %s1165_s22   ;;  %p1644_p3 = scmp.ne.s32.totalorder (!%p1643_p7), %s1634_s29, 0 }
  0x80   : > { %289 = sbr.rel (%p1643_p7) target bundleno = 862 (0x35e), region = 36  ;;  %s747_s19 = sshll.u32 (!%p1643_p7), %s1438_s1, 3 }
  0x81   : > { %s292_s10 = scalar_lea.sflag (!%p1643_p7), [#allocation3], %s1438_s1  ;;  %s295_s13 = scalar_lea.vmem (!%p1643_p7), [#allocation2], %s747_s19 }
  0x87   : > { %1140 = dma.done.wait (%p1644_p3), %s292_s10, 128  }
  0x88   : > { %1142 = vsyncadd (%p1644_p3), %s292_s10, 4294967168  ;;  %p1645_p12 = scmp.eq.s32.totalorder %s1272_s27, 0 }
  0x8a   : > { %1144 = dma.done.wait (%p1645_p12), [#allocation6], 288   ;;  %p1646_p11 = pmov %p1645_p12 }
  0x8c   : > { %1146 = vsyncadd (%p1646_p11), [#allocation6], 4294967008  ;;  %p1647_p2 = pmov %p1646_p11 }
  0x8e   : > { %1148 = dma.done.wait (%p1647_p2), [#allocation9], 16   ;;  %p1648_p4 = pmov %p1647_p2 }
  0x8f   : > { %vm349_vm0 = vcmask 261120   ;;  %v347_v0 = vld [vmem:[%s295_s13] sm:$0xff]  ;;  %v913_v7 = vld [vmem:[#allocation7] sm:$0xff]   ;;  %v1189_v8 = vmov 0.0   ;;  %vm1190_vm1 = vmmov 0   ;;  %v364_v12 = vlaneseq  ;;  %s1458_s29 = sshll.u32 %s1438_s1, 4 }
  0x90   : > { %1150 = vsyncadd (%p1648_p4), [#allocation9], 4294967280  ;;  %v350_v1 = vsel %vm349_vm0, %v347_v0, 0.0  ;;  %786 = vmatprep.subr.bf16.mxu0 %v1189_v8  ;;  %790 = vmatprep.mubr.msk.bf16.mxu0 %vm1190_vm1, %v1189_v8  ;;  %v914_v9 = vld [vmem:[#allocation7 + $0x8] sm:$0xff]   ;;  %v348_v16 = vld [vmem:[#allocation5] sm:$0x3] }
  0x91   : > { %351 = vadd.xlane.f32.xlu0 %v350_v1  ;;  %787 = vmatpush3.bf16.msra.mxu0 %v913_v7  ;;  %v365_v14 = vshrl.u32 %v364_v12, 7  ;;  %v754_v25 = vld [vmem:[#allocation8] ss:$0 sm:$0xff]  ;;  %vm442_vm2 = vcmask 60416   ;;  %s1191_s7 = smov 80   ;;  %s1192_s9 = smov 96  }
  0x92   : > { %788 = vmatprep.subr.bf16.mxu0 %v1189_v8  ;;  %s1461_s11 = scalar_lea.vmem [#allocation10], %s1458_s29  ;;  %s1193_s15 = smov 104  }
  0x93   : > { %v366_v15 = vsub.s32 0, %v365_v14  ;;  %v371_v17 = vsub.s32 1, %v365_v14  ;;  %s1194_s28 = smov 88   ;;  %s1195_s17 = smov 72  }
  0x94   : > { %s1196_s16 = smov 64   ;;  %s1197_s18 = smov 120  }
  0x95   : > { %789 = vmatpush3.bf16.msra.mxu0 %v914_v9  ;;  %v367_v18 = vrot.slane %v348_v16, %v366_v15  ;;  %v372_v21 = vrot.slane %v348_v16, %v371_v17  ;;  %s1198_s14 = smov 56   ;;  %s1199_s19 = smov 112  }
  0x96   : > { %s1200_s10 = smov 48   ;;  %s1201_s13 = smov 40  }
 0x11e   : > { %v352_v2 = vpop.xlane.xlu0 %351 }
 0x11f   : > { %v354_v3 = vmul.f32 0.03125, %v352_v2 }
 0x121   : > { %v355_v4 = vsub.f32 %v347_v0, %v354_v3 }
 0x123   : > { %v356_v5 = vmul.f32 %v355_v4, %v355_v4 }
 0x125   : > { %v357_v6 = vsel %vm349_vm0, %v356_v5, 0.0 }
 0x126   : > { %358 = vadd.xlane.f32.xlu0 %v357_v6 }
 0x1b3   : > { %v359_v10 = vpop.xlane.xlu0 %358 }
 0x1b4   : > { %v360_v11 = vmul.f32 0.03125, %v359_v10 }
 0x1b6   : > { %v361_v13 = vadd.f32 1e-05, %v360_v11 }
 0x1b8   : > { %915 = vrsqrt.f32 %v361_v13 }
 0x1c2   : > { %v916_v19 = vpop.eup %915 }
 0x1c3   : > { %v363_v20 = vmul.f32 %v916_v19, %v355_v4 }
 0x1c5   : > { %v368_v22 = vmul.f32 %v367_v18, %v363_v20 }
 0x1c7   : > { %v373_v23 = vadd.f32 %v372_v21, %v368_v22 }
 0x1c9   : > { %v374_v24 = vpack.c.bf16 %v373_v23, %v373_v23 }
 0x1cb   : > { %791 = vmatmul.mubr.msk.bf16.vlgmr.msra.gmra.mrb[0].mxu0 %vm349_vm0, %v374_v24 }
 0x29e   : > { %v435_v26 = vpop.f32.mrb[0].mxu0 }
 0x29f   : > { %v436_v27 = vadd.f32 %v754_v25, %v435_v26  ;;  %v792_v28 = vpop.f32.mrb[1].mxu0 }
 0x2a0   : > { %v438_v29 = vpop.f32.mrb[2].mxu0 }
 0x2a1   : > { %v441_v30 = vpack.c.bf16 %v436_v27, %v436_v27  ;;  %v793_v31 = vpop.f32.mrb[3].mxu0 }
 0x2a3   : > { %475 = vrot.lane.b32.xlu0 %v441_v30, %s1191_s7  ;;  %447 = vrot.lane.b32.xlu1 %v441_v30, %s1192_s9  ;;  %443 = vst.msk [vmem:[%s1461_s11] sm:$0xf] %vm442_vm2, %v441_v30  ;;  %s338_s7 = scalar_lea.vmem [#allocation11], %s1458_s29 }
 0x2a4   : > { %s542_s9 = sshll.u32 %s338_s7, 4  ;;  %s1476_s9 = int_to_ptr.vmem [resolvable:$true] %s542_s9 }
 0x2a7   : > { %485 = vrot.lane.b32.xlu0 %v441_v30, %s1193_s15  ;;  %460 = vrot.lane.b32.xlu1 %v441_v30, %s1194_s28  ;;  %s505_s15 = sand.u32 1, %s1272_s27   ;;  %s1471_s28 = sshll.u32 %s1173_s24, 8 }
 0x2a8   : > { %s1485_s24 = scalar_lea.sflag [#allocation12], %s505_s15  ;;  %s1031_s27 = scalar_lea.vmem %s1476_s9, 256 }
 0x2a9   : > { %p1032_p6 = scmp.ne.s32.totalorder %s1476_s9, %s1031_s27 }
 0x2ab   : > { %490 = vrot.lane.b32.xlu1 %v441_v30, %s1195_s17  ;;  %p1033_p8 = pnand %p1032_p6, %p1383_p1 }
 0x2ad   : > { %p1034_p0 = pneg %p1033_p8 }
 0x2af   : > { %451 = vrot.lane.b32.xlu1 %v441_v30, %s1196_s16 }
 0x2b3   : > { %455 = vrot.lane.b32.xlu1 %v441_v30, %s1197_s18 }
 0x2b7   : > { %465 = vrot.lane.b32.xlu1 %v441_v30, %s1198_s14  ;;  %s1482_s14 = scalar_lea.hbm %s1627_s5, %s1471_s28 }
 0x2bb   : > { %470 = vrot.lane.b32.xlu1 %v441_v30, %s1199_s19  ;;  %s1202_s19 = smov [#allocation11]  }
 0x2bf   : > { %480 = vrot.lane.b32.xlu1 %v441_v30, %s1200_s10  ;;  %s1035_s10 = sshll.u32 %s1202_s19, 4  ;;  %s1036_s10 = int_to_ptr.vmem [resolvable:$false] %s1035_s10 }
 0x2c0   : > { %p1038_p5 = scmp.lt.s32.totalorder %s1476_s9, %s1036_s10 }
 0x2c3   : > { %495 = vrot.lane.b32.xlu1 %v441_v30, %s1201_s13  ;;  %s1037_s13 = scalar_lea.vmem %s1036_s10, 512 }
 0x2c4   : > { %p1039_p10 = scmp.lt.s32.totalorder %s1037_s13, %s1031_s27 }
 0x2c6   : > { %p1040_p13 = por %p1039_p10, %p1038_p5 }
 0x2c8   : > { %p1041_p9 = pnand %p1040_p13, %p1034_p0 }
 0x315   : > { %v476_v32 = vpop.permute.xlu0 %475  ;;  %v448_v33 = vpop.permute.xlu1 %447 }
 0x316   : > { %763 = vst.msk [vmem:[%s338_s7 + $0x8] sm:$0xf] %vm442_vm2, %v476_v32  ;;  %450 = vst.msk [vmem:[%s338_s7] sm:$0xf] %vm442_vm2, %v448_v33 }
 0x319   : > { %v486_v34 = vpop.permute.xlu0 %485  ;;  %v461_v35 = vpop.permute.xlu1 %460 }
 0x31a   : > { %765 = vst.msk [vmem:[%s1461_s11 + $0xc] sm:$0xf] %vm442_vm2, %v486_v34  ;;  %760 = vst.msk [vmem:[%s338_s7 + $0x4] sm:$0xf] %vm442_vm2, %v461_v35 }
 0x31d   : > { %v491_v36 = vpop.permute.xlu1 %490 }
 0x31e   : > { %766 = vst.msk [vmem:[%s338_s7 + $0xc] sm:$0xf] %vm442_vm2, %v491_v36 }
 0x31f   : > { %1044 = shalt.err (!%p1041_p9)
}
 0x320   : > { %s1045_s7 = scalar_lea.hbm %s1482_s14, 256  ;;  %s1049_s18 = scalar_lea.hbm %s1627_s5, 512 }
 0x321   : > { %p1046_p7 = scmp.ne.s32.totalorder %s1482_s14, %s1045_s7  ;;  %p1050_p11 = scmp.lt.u32.totalorder %s1482_s14, %s1627_s5 }
 0x322   : > { %p1051_p2 = scmp.lt.u32.totalorder %s1049_s18, %s1045_s7  ;;  %p1053_p6 = scmp.lt.u32.totalorder %s1045_s7, %s1482_s14 }
 0x323   : > { %p1047_p3 = pnand %p1046_p7, %p1383_p1 }
 0x324   : > { %p1052_p4 = por %p1051_p2, %p1050_p11 }
 0x325   : > { %p1048_p12 = pneg %p1047_p3 }
 0x326   : > { %p1054_p8 = por %p1053_p6, %p1052_p4 }
 0x328   : > { %p1055_p0 = pnand %p1054_p8, %p1048_p12 }
 0x32a   : > { %1058 = shalt.err (!%p1055_p0)
}
 0x32b   : > { %s1203_s27 = smov 4   ;;  %v452_v37 = vpop.permute.xlu1 %451  ;;  %s1513_s13 = scalar_lea.vmem [#allocation13], %s1458_s29 }
 0x32c   : > { %809 = dma.vmem_to_hbm [thread:$0]  (%p1383_p1), %s1476_s9, 256, %s1482_s14, %s1485_s24, %s1196_s16, %s1196_s16, %s1203_s27  }
 0x32d   : > { %454 = vst.msk [vmem:[%s1513_s13] sm:$0xf] %vm442_vm2, %v452_v37  ;;  %s525_s7 = sshll.u32 %s1461_s11, 4  ;;  %s1528_s29 = scalar_lea.hbm %s1626_s4, %s1471_s28  ;;  %s1522_s7 = int_to_ptr.vmem [resolvable:$true] %s525_s7 }
 0x32e   : > { %s1059_s14 = scalar_lea.vmem %s1522_s7, 256  ;;  %s1204_s18 = smov [#allocation10]  }
 0x32f   : > { %v456_v38 = vpop.permute.xlu1 %455  ;;  %p1060_p5 = scmp.ne.s32.totalorder %s1522_s7, %s1059_s14  ;;  %s1063_s19 = sshll.u32 %s1204_s18, 4  ;;  %s1064_s19 = int_to_ptr.vmem [resolvable:$false] %s1063_s19 }
 0x330   : > { %759 = vst.msk [vmem:[%s1461_s11 + $0x4] sm:$0xf] %vm442_vm2, %v456_v38  ;;  %s1065_s10 = scalar_lea.vmem %s1064_s19, 512  ;;  %p1066_p9 = scmp.lt.s32.totalorder %s1522_s7, %s1064_s19 }
 0x331   : > { %p1061_p10 = pnand %p1060_p5, %p1383_p1  ;;  %p1067_p7 = scmp.lt.s32.totalorder %s1065_s10, %s1059_s14 }
 0x333   : > { %v466_v39 = vpop.permute.xlu1 %465  ;;  %p1062_p13 = pneg %p1061_p10  ;;  %p1068_p3 = por %p1067_p7, %p1066_p9 }
 0x334   : > { %761 = vst.msk [vmem:[%s1513_s13 + $0x4] sm:$0xf] %vm442_vm2, %v466_v39 }
 0x335   : > { %p1069_p12 = pnand %p1068_p3, %p1062_p13 }
 0x337   : > { %v471_v40 = vpop.permute.xlu1 %470 }
 0x338   : > { %762 = vst.msk [vmem:[%s1461_s11 + $0x8] sm:$0xf] %vm442_vm2, %v471_v40 }
 0x339   : > { %1072 = shalt.err (!%p1069_p12)
}
 0x33a   : > { %s1073_s11 = scalar_lea.hbm %s1528_s29, 256  ;;  %s1077_s18 = scalar_lea.hbm %s1626_s4, 512 }
 0x33b   : > { %p1074_p11 = scmp.ne.s32.totalorder %s1528_s29, %s1073_s11  ;;  %p1078_p6 = scmp.lt.u32.totalorder %s1528_s29, %s1626_s4 }
 0x33c   : > { %p1079_p8 = scmp.lt.u32.totalorder %s1077_s18, %s1073_s11  ;;  %p1081_p5 = scmp.lt.u32.totalorder %s1073_s11, %s1528_s29 }
 0x33d   : > { %p1075_p2 = pnand %p1074_p11, %p1383_p1 }
 0x33e   : > { %p1080_p0 = por %p1079_p8, %p1078_p6 }
 0x33f   : > { %p1076_p4 = pneg %p1075_p2 }
 0x340   : > { %p1082_p10 = por %p1081_p5, %p1080_p0 }
 0x342   : > { %p1083_p13 = pnand %p1082_p10, %p1076_p4 }
 0x344   : > { %1086 = shalt.err (!%p1083_p13)
}
 0x345   : > { %s1649_s14 = scalar_lea.sflag [#allocation4], %s1438_s1  ;;  %s559_s9 = sshll.u32 %s1513_s13, 4  ;;  %v481_v41 = vpop.permute.xlu1 %480  ;;  %s1562_s9 = int_to_ptr.vmem [resolvable:$true] %s559_s9 }
 0x346   : > { %808 = dma.vmem_to_hbm [thread:$0]  (%p1383_p1), %s1522_s7, 256, %s1528_s29, %s1649_s14, %s1196_s16, %s1196_s16, %s1203_s27  }
 0x347   : > { %764 = vst.msk [vmem:[%s1513_s13 + $0x8] sm:$0xf] %vm442_vm2, %v481_v41  ;;  %s1568_s1 = scalar_lea.hbm %s1628_s6, %s1471_s28  ;;  %s1087_s15 = scalar_lea.vmem %s1562_s9, 256 }
 0x348   : > { %p1088_p9 = scmp.ne.s32.totalorder %s1562_s9, %s1087_s15  ;;  %s1205_s7 = smov [#allocation13]  }
 0x349   : > { %v496_v42 = vpop.permute.xlu1 %495  ;;  %s1091_s29 = sshll.u32 %s1205_s7, 4  ;;  %s1092_s29 = int_to_ptr.vmem [resolvable:$false] %s1091_s29 }
 0x34a   : > { %767 = vst.msk [vmem:[%s1513_s13 + $0xc] sm:$0xf] %vm442_vm2, %v496_v42  ;;  %p1089_p7 = pnand %p1088_p9, %p1383_p1  ;;  %s1093_s17 = scalar_lea.vmem %s1092_s29, 512 }
 0x34b   : > { %p1094_p12 = scmp.lt.s32.totalorder %s1562_s9, %s1092_s29  ;;  %p1095_p11 = scmp.lt.s32.totalorder %s1093_s17, %s1087_s15 }
 0x34c   : > { %p1090_p3 = pneg %p1089_p7 }
 0x34d   : > { %p1096_p2 = por %p1095_p11, %p1094_p12 }
 0x34f   : > { %p1097_p4 = pnand %p1096_p2, %p1090_p3 }
 0x351   : > { %1100 = shalt.err (!%p1097_p4)
}
 0x352   : > { %s1101_s28 = scalar_lea.hbm %s1568_s1, 256  ;;  %s1105_s19 = scalar_lea.hbm %s1628_s6, 512 }
 0x353   : > { %p1102_p6 = scmp.ne.s32.totalorder %s1568_s1, %s1101_s28  ;;  %p1106_p5 = scmp.lt.u32.totalorder %s1568_s1, %s1628_s6 }
 0x354   : > { %p1107_p10 = scmp.lt.u32.totalorder %s1105_s19, %s1101_s28  ;;  %p1109_p9 = scmp.lt.u32.totalorder %s1101_s28, %s1568_s1 }
 0x355   : > { %p1103_p8 = pnand %p1102_p6, %p1383_p1 }
 0x356   : > { %p1108_p13 = por %p1107_p10, %p1106_p5 }
 0x357   : > { %p1104_p0 = pneg %p1103_p8 }
 0x358   : > { %p1110_p7 = por %p1109_p9, %p1108_p13 }
 0x35a   : > { %p1111_p3 = pnand %p1110_p7, %p1104_p0 }
 0x35c   : > { %1114 = shalt.err (!%p1111_p3)
}
 0x35d   : > { %810 = dma.vmem_to_hbm [thread:$0]  (%p1383_p1), %s1562_s9, 256, %s1568_s1, %s1485_s24, %s1196_s16, %s1196_s16, %s1203_s27  }
 0x35e PF: > { %s574_s11 = sand.u32 1, %s1161_s21   ;;  %p1650_p12 = scmp.ne.s32.totalorder %s1635_s30, 0 }
 0x35f   : > { %p1651_p11 = scmp.ge.s32.totalorder %s1181_s26, 2  ;;  %s575_s15 = scalar_lea.sflag [#allocation4], %s574_s11 }
 0x361   : > { %p829_p2 = pnand %p1651_p11, %p1650_p12 }
 0x363   : > { %1152 = dma.done.wait (!%p829_p2), %s575_s15, 256  }
 0x364   : > { %1154 = vsyncadd (!%p829_p2), %s575_s15, 4294967040  ;;  %s1652_s12 = sadd.s32 4294967294, %s1181_s26  }
 0x365   : > { %s583_s7 = sand.u32 1, %s1652_s12  }
 0x366   : > { %s584_s29 = scalar_lea.sflag [#allocation12], %s583_s7 }
 0x367   : > { %1156 = dma.done.wait (!%p829_p2), %s584_s29, 512  }
 0x368   : > { %1158 = vsyncadd (!%p829_p2), %s584_s29, 4294966784  ;;  %s28_s26 = sadd.s32 1, %s1181_s26   ;;  %s1653_s21 = smov %s1165_s22 }
 0x369   : > { %p25_p1 = scmp.ge.s32.totalorder %s28_s26, 4   ;;  %s1654_s22 = smov %s1169_s23 }
 0x36a   : > { %s1655_s23 = smov %s1395_s8  ;;  %s1656_s24 = smov %s1177_s25 }
 0x36b   : > { %s1657_s25 = smov %s1659_s20  ;;  %27 = sbr.rel (!%p25_p1) target bundleno = 12 (0xc), region = 134 }
 0x372   :  { %598 = vsyncpa [#allocation3], 1 }
 0x373   :  { %600 = vsyncpa [#allocation3 + $0x1], 1 }
 0x374   :  { %601 = vsyncpa [#allocation6], 1 }
 0x375   :  { %602 = vsyncpa [#allocation9], 1 }
 0x376   :  { %603 = vsyncpa [#allocation4], 1 }
 0x377   :  { %605 = vsyncpa [#allocation4 + $0x1], 1 }
 0x378   :  { %606 = vsyncpa [#allocation12], 1 }
 0x379   :  { %608 = vsyncpa [#allocation12 + $0x1], 1 }

</bundles_post_ra>
